<compile_context>
chip_gen: v7x
topology: tpu7x:2x2x1
jax: 0.10.0
libtpu: 0.0.40
codegen_flags: <defaults>
</compile_context>

<pallas_src>
import functools

import jax
import jax.numpy as jnp
from jax import lax
from jax.experimental import pallas as pl
from jax.experimental.pallas import tpu as pltpu


def _round_up(x, m):
    return pl.cdiv(x, m) * m


def _conv_stats_kernel(p_ref, w_ref, y_ref, sum_ref, sq_ref):
    """One M tile: bf16 matmul on the MXU (fp32 result) + per-tile channel partial
    sums / sums-of-squares for BatchNorm batch statistics (reduced to 8 sublane rows
    in-kernel; the final tiny reduction happens in the wrapper)."""
    y = jnp.dot(p_ref[...], w_ref[...], preferred_element_type=jnp.float32)
    y_ref[...] = y
    rows, cp = y.shape
    y8 = y.reshape(rows // 8, 8, cp)
    sum_ref[...] = jnp.sum(y8, axis=0)[None]
    sq_ref[...] = jnp.sum(y8 * y8, axis=0)[None]


def _bn_relu_pool_kernel(*refs, avg):
    """BatchNorm affine apply + ReLU + pooling.  The pool^2 taps of every pooling
    window arrive as pool^2 separate row slabs (same shape), so pooling is a pure
    element-wise max / mean across the slabs -- no cross-sublane work."""
    p2 = len(refs) - 3
    y_refs = refs[:p2]
    scale_ref, shift_ref, o_ref = refs[p2], refs[p2 + 1], refs[p2 + 2]
    s = scale_ref[...]
    b = shift_ref[...]
    acc = jnp.maximum(y_refs[0][...] * s + b, 0.0)
    for r in y_refs[1:]:
        z = jnp.maximum(r[...] * s + b, 0.0)
        if avg:
            acc = acc + z
        else:
            acc = jnp.maximum(acc, z)
    if avg:
        acc = acc * (1.0 / p2)
    o_ref[...] = acc


def conv_cnn_forward(x_nchw, w_oihw, bias, gamma, beta, *, padding=2, pool=2,
                     avg=False, eps=1e-5):
    N, Cin, H, W = x_nchw.shape
    Cout, _, K, _ = w_oihw.shape
    Ho = H + 2 * padding - K + 1
    Wo = W + 2 * padding - K + 1
    Hp_, Wp_ = Ho // pool, Wo // pool
    p2 = pool * pool
    G = N * Hp_ * Wp_            # number of pooling windows
    KC = K * K * Cin
    M_true = N * Ho * Wo         # true number of conv output positions (for BN stats)

    # Conv bias cancels exactly under training-mode BatchNorm -> drop it.
    del bias

    # ---- glue: im2col in NHWC; rows ordered (pool-tap, n, hp, wp) so the pool kernel
    # can reduce element-wise over pool^2 contiguous slabs of the conv output. ----
    x = jnp.transpose(x_nchw, (0, 2, 3, 1)).astype(jnp.float32)
    xp = jnp.pad(x, ((0, 0), (padding, padding), (padding, padding), (0, 0)))
    taps = [xp[:, kh:kh + Ho, kw:kw + Wo, :] for kh in range(K) for kw in range(K)]
    p5 = jnp.stack(taps, axis=3).reshape(N, Ho, Wo, KC)   # (kh,kw,cin) minor ordering

    # ---- tiling ----
    tm = 256                       # conv M tile: >=2 tiles at these sizes -> v7x dual-TC sharding
    Cp = _round_up(Cout, 128)      # lane-dense output channels
    Kp = _round_up(KC, 128)
    if G <= 2048:
        Gp = _round_up(G, 8)
        tg = Gp                    # whole pooled tensor in one pool-kernel grid step
    else:
        tg = 512
        Gp = _round_up(G, tg)

    # main (pool-covered) region, slab-ordered; each slab zero-padded G -> Gp
    main = p5[:, :Hp_ * pool, :Wp_ * pool, :].reshape(N, Hp_, pool, Wp_, pool, KC)
    main = jnp.transpose(main, (2, 4, 0, 1, 3, 5)).reshape(p2, G, KC)
    main = jnp.pad(main, ((0, 0), (0, Gp - G), (0, 0))).reshape(p2 * Gp, KC)
    # positions not covered by pooling (odd Ho/Wo) still feed the BN statistics
    tails = []
    if Ho > Hp_ * pool:
        tails.append(p5[:, Hp_ * pool:, :, :].reshape(-1, KC))
    if Wo > Wp_ * pool:
        tails.append(p5[:, :Hp_ * pool, Wp_ * pool:, :].reshape(-1, KC))
    rows = jnp.concatenate([main] + tails, axis=0) if tails else main

    Mrows = rows.shape[0]
    Mp = _round_up(Mrows, tm)
    n_mtiles = Mp // tm

    patches_p = jnp.zeros((Mp, Kp), jnp.bfloat16).at[:Mrows, :KC].set(
        rows.astype(jnp.bfloat16))
    w_mat = jnp.transpose(w_oihw, (2, 3, 1, 0)).reshape(KC, Cout)
    w_p = jnp.zeros((Kp, Cp), jnp.bfloat16).at[:KC, :Cout].set(
        w_mat.astype(jnp.bfloat16))

    # ---- kernel 1: conv matmul + partial BN statistics ----
    y_p, psum, psq = pl.pallas_call(
        _conv_stats_kernel,
        out_shape=(
            jax.ShapeDtypeStruct((Mp, Cp), jnp.float32),
            jax.ShapeDtypeStruct((n_mtiles, 8, Cp), jnp.float32),
            jax.ShapeDtypeStruct((n_mtiles, 8, Cp), jnp.float32),
        ),
        grid=(n_mtiles,),
        in_specs=[
            pl.BlockSpec((tm, Kp), lambda i: (i, 0)),       # im2col patch tile (bf16)
            pl.BlockSpec((Kp, Cp), lambda i: (0, 0)),       # weights resident in VMEM
        ],
        out_specs=[
            pl.BlockSpec((tm, Cp), lambda i: (i, 0)),       # conv output (fp32)
            pl.BlockSpec((1, 8, Cp), lambda i: (i, 0, 0)),  # per-tile partial sums
            pl.BlockSpec((1, 8, Cp), lambda i: (i, 0, 0)),  # per-tile partial sum-of-squares
        ],
        compiler_params=pltpu.CompilerParams(
            dimension_semantics=("parallel",)),
    )(patches_p, w_p)

    # ---- BatchNorm training-mode statistics folded into scale/shift (tiny, wrapper) ----
    csum = jnp.sum(psum, axis=(0, 1))[:Cout]
    csq = jnp.sum(psq, axis=(0, 1))[:Cout]
    mean = csum / M_true
    var = jnp.maximum(csq / M_true - mean * mean, 0.0)
    scale = gamma.astype(jnp.float32) / jnp.sqrt(var + eps)
    shift = beta.astype(jnp.float32) - mean * scale
    scale_p = jnp.zeros((1, Cp), jnp.float32).at[0, :Cout].set(scale)
    shift_p = jnp.zeros((1, Cp), jnp.float32).at[0, :Cout].set(shift)

    # ---- kernel 2: BN apply + ReLU + pool (reads the padded conv output directly) ----
    bps = Gp // tg   # blocks per slab

    def slab_map(s):
        return lambda i: (s * bps + i, 0)

    pooled = pl.pallas_call(
        functools.partial(_bn_relu_pool_kernel, avg=avg),
        out_shape=jax.ShapeDtypeStruct((Gp, Cp), jnp.float32),
        grid=(bps,),
        in_specs=[pl.BlockSpec((tg, Cp), slab_map(s)) for s in range(p2)]
        + [pl.BlockSpec((1, Cp), lambda i: (0, 0)),
           pl.BlockSpec((1, Cp), lambda i: (0, 0))],
        out_specs=pl.BlockSpec((tg, Cp), lambda i: (i, 0)),
        compiler_params=pltpu.CompilerParams(
            dimension_semantics=("parallel",)),
    )(*([y_p] * p2), scale_p, shift_p)

    out = pooled[:G, :Cout].reshape(N, Hp_, Wp_, Cout)
    return jnp.transpose(out, (0, 3, 1, 2))   # NCHW, matches PyTorch


def reference_forward(x, w, b, gamma, beta, *, padding=2, pool=2, avg=False, eps=1e-5):
    """Pure-JAX fp32 reference (XLA conv, includes the conv bias) for correctness."""
    z = lax.conv_general_dilated(
        x, w, window_strides=(1, 1),
        padding=[(padding, padding), (padding, padding)],
        dimension_numbers=('NCHW', 'OIHW', 'NCHW'))
    z = z + b[None, :, None, None]
    mean = jnp.mean(z, axis=(0, 2, 3), keepdims=True)
    var = jnp.var(z, axis=(0, 2, 3), keepdims=True)
    z = (z - mean) / jnp.sqrt(var + eps)
    z = z * gamma[None, :, None, None] + beta[None, :, None, None]
    z = jnp.maximum(z, 0.0)
    if avg:
        z = lax.reduce_window(z, 0.0, lax.add, (1, 1, pool, pool),
                              (1, 1, pool, pool), 'VALID') / (pool * pool)
    else:
        z = lax.reduce_window(z, -jnp.inf, lax.max, (1, 1, pool, pool),
                              (1, 1, pool, pool), 'VALID')
    return z


if __name__ == "__main__":
    key = jax.random.PRNGKey(0)
    kx, kw, kb = jax.random.split(key, 3)
    insize, outsize, ksize, padding, pool = 4, 8, 7, 2, 2

    x = jax.random.normal(kx, (2, insize, 16, 16), jnp.float32)
    w = jax.random.normal(kw, (outsize, insize, ksize, ksize), jnp.float32) * 0.05
    b = jax.random.normal(kb, (outsize,), jnp.float32) * 0.1
    gamma = jnp.ones((outsize,), jnp.float32)   # nn.BatchNorm2d default weight
    beta = jnp.zeros((outsize,), jnp.float32)   # nn.BatchNorm2d default bias

    for avg in (False, True):   # module default is avg=False (maxpool branch)
        out = conv_cnn_forward(x, w, b, gamma, beta,
                               padding=padding, pool=pool, avg=avg)
        out = jax.block_until_ready(out)
        ref = reference_forward(x, w, b, gamma, beta,
                                padding=padding, pool=pool, avg=avg)
        assert out.shape == ref.shape, (out.shape, ref.shape)
        err = float(jnp.max(jnp.abs(out - ref)))
        # bf16 MXU operands -> slightly looser tolerance than pure fp32
        assert jnp.allclose(out, ref, atol=2e-2, rtol=2e-2), err

    print("KERNEL_OK")
</pallas_src>

<mosaic_0001>
module attributes {stable_mosaic.version = 11 : i64} {
  func.func @_conv_stats_kernel(%arg0: i32, %arg1: memref<256x256xbf16, #tpu.memory_space<vmem>>, %arg2: memref<256x128xbf16, #tpu.memory_space<vmem>>, %arg3: memref<256x128xf32, #tpu.memory_space<vmem>>, %arg4: memref<1x8x128xf32, #tpu.memory_space<vmem>>, %arg5: memref<1x8x128xf32, #tpu.memory_space<vmem>>) attributes {dimension_semantics = [#tpu.dimension_semantics<parallel>], iteration_bounds = array<i64: 2>, scalar_prefetch = 0 : i64, scratch_operands = 0 : i64, tpu.core_type = #tpu.core_type<tc>, window_params = [{transform_indices = @transform_0, window_bounds = array<i64: 256, 256>}, {pipeline_mode = #tpu.pipeline_mode<synchronous>, transform_indices = @transform_1, window_bounds = array<i64: 256, 128>}, {transform_indices = @transform_2, window_bounds = array<i64: 256, 128>}, {transform_indices = @transform_3, window_bounds = array<i64: 1, 8, 128>}, {transform_indices = @transform_4, window_bounds = array<i64: 1, 8, 128>}]} {
    %c0 = arith.constant 0 : index
    %c0_0 = arith.constant 0 : index
    %0 = vector.load %arg1[%c0, %c0_0] : memref<256x256xbf16, #tpu.memory_space<vmem>>, vector<256x256xbf16>
    %c0_1 = arith.constant 0 : index
    %c0_2 = arith.constant 0 : index
    %1 = vector.load %arg2[%c0_1, %c0_2] : memref<256x128xbf16, #tpu.memory_space<vmem>>, vector<256x128xbf16>
    %cst = arith.constant dense<0.000000e+00> : vector<256x128xf32>
    %2 = tpu.matmul %0, %1, %cst {dimension_numbers = #tpu.dot_dimension_numbers<[1], [0], [0], [1], [0, 0, 1, 1], [], []>} : vector<256x256xbf16>, vector<256x128xbf16>, vector<256x128xf32> -> vector<256x128xf32>
    %c0_3 = arith.constant 0 : index
    %c0_4 = arith.constant 0 : index
    %3 = vector.load %arg3[%c0_3, %c0_4] : memref<256x128xf32, #tpu.memory_space<vmem>>, vector<256x128xf32>
    tpu.vector_store %arg3[%c0_3, %c0_4], %2 {strides = array<i32>} : memref<256x128xf32, #tpu.memory_space<vmem>>, vector<256x128xf32>,
    %4 = vector.shape_cast %2 : vector<256x128xf32> to vector<32x8x128xf32>
    %cst_5 = arith.constant dense<0.000000e+00> : vector<8x128xf32>
    %5 = vector.multi_reduction <add>, %4, %cst_5 [0] : vector<32x8x128xf32> to vector<8x128xf32>
    %6 = vector.shape_cast %5 : vector<8x128xf32> to vector<1x8x128xf32>
    %c0_6 = arith.constant 0 : index
    %c0_7 = arith.constant 0 : index
    %c0_8 = arith.constant 0 : index
    %7 = vector.load %arg4[%c0_6, %c0_7, %c0_8] : memref<1x8x128xf32, #tpu.memory_space<vmem>>, vector<1x8x128xf32>
    tpu.vector_store %arg4[%c0_6, %c0_7, %c0_8], %6 {strides = array<i32>} : memref<1x8x128xf32, #tpu.memory_space<vmem>>, vector<1x8x128xf32>,
    %8 = arith.mulf %4, %4 : vector<32x8x128xf32>
    %cst_9 = arith.constant dense<0.000000e+00> : vector<8x128xf32>
    %9 = vector.multi_reduction <add>, %8, %cst_9 [0] : vector<32x8x128xf32> to vector<8x128xf32>
    %10 = vector.shape_cast %9 : vector<8x128xf32> to vector<1x8x128xf32>
    %c0_10 = arith.constant 0 : index
    %c0_11 = arith.constant 0 : index
    %c0_12 = arith.constant 0 : index
    %11 = vector.load %arg5[%c0_10, %c0_11, %c0_12] : memref<1x8x128xf32, #tpu.memory_space<vmem>>, vector<1x8x128xf32>
    tpu.vector_store %arg5[%c0_10, %c0_11, %c0_12], %10 {strides = array<i32>} : memref<1x8x128xf32, #tpu.memory_space<vmem>>, vector<1x8x128xf32>,
    return
  }
  func.func @transform_0(%arg0: i32) -> (i32, i32) {
    %c0_i32 = arith.constant 0 : i32
    %c0_i32_0 = arith.constant 0 : i32
    return %arg0, %c0_i32 : i32, i32
  }
  func.func @transform_1(%arg0: i32) -> (i32, i32) {
    %c0_i32 = arith.constant 0 : i32
    %c0_i32_0 = arith.constant 0 : i32
    %c0_i32_1 = arith.constant 0 : i32
    return %c0_i32, %c0_i32_0 : i32, i32
  }
  func.func @transform_2(%arg0: i32) -> (i32, i32) {
    %c0_i32 = arith.constant 0 : i32
    %c0_i32_0 = arith.constant 0 : i32
    return %arg0, %c0_i32 : i32, i32
  }
  func.func @transform_3(%arg0: i32) -> (i32, i32, i32) {
    %c0_i32 = arith.constant 0 : i32
    %c0_i32_0 = arith.constant 0 : i32
    %c0_i32_1 = arith.constant 0 : i32
    return %arg0, %c0_i32, %c0_i32_0 : i32, i32, i32
  }
  func.func @transform_4(%arg0: i32) -> (i32, i32, i32) {
    %c0_i32 = arith.constant 0 : i32
    %c0_i32_0 = arith.constant 0 : i32
    %c0_i32_1 = arith.constant 0 : i32
    return %arg0, %c0_i32, %c0_i32_0 : i32, i32, i32
  }
}

</mosaic_0001>

<bundles_post_ra>
// kernel: tpu_custom_call.1
= control target key start
LH: loop header
LB: loop body
LE: loop exit
PB: predicated region body
PF: predicated region fallthrough
CT: control target
= control target key end

     0   :  { %10 = vsyncpa [#allocation3], 0  ;;  %s2062_s0 = inlined_call_operand.hbm [shape: bf16[512,256], index: 0, kind: input, shape index: {}]   ;;  %s2063_s1 = inlined_call_operand.hbm [shape: bf16[256,128], index: 1, kind: input, shape index: {}]   ;;  %s2064_s2 = inlined_call_operand.hbm [shape: f32[512,128], index: 2, kind: output, shape index: {0}]   ;;  %s2065_s3 = inlined_call_operand.hbm [shape: f32[2,8,128], index: 3, kind: output, shape index: {1}]   ;;  %s2066_s4 = inlined_call_operand.hbm [shape: f32[2,8,128], index: 4, kind: output, shape index: {2}]  }
   0x1   :  { %12 = vsyncpa [#allocation3 + $0x1], 0 }
   0x2   :  { %13 = vsyncpa [#allocation6], 0 }
   0x3   :  { %14 = vsyncpa [#allocation4], 0 }
   0x4   :  { %16 = vsyncpa [#allocation4 + $0x1], 0 }
   0x5   :  { %17 = vsyncpa [#allocation9], 0 }
   0x6   :  { %19 = vsyncpa [#allocation9 + $0x1], 0  ;;  %s1621_s15 = smov 0   ;;  %s1623_s16 = smov 0  }
   0x7   :  { %s1625_s17 = smov 0   ;;  %s1627_s18 = smov 0  }
   0x8 LB: > { %s1642_s19 = sadd.s32 4294967295, %s1583_s18   ;;  %s1056_s20 = sadd.s32 4294967294, %s1583_s18   ;;  %s1583_s18 = sphi %s1627_s18, %s2086_s18   ;;  %s1579_s17 = sphi %s1625_s17, %s2085_s17   ;;  %s1575_s16 = sphi %s1623_s16, %s2084_s16   ;;  %s1571_s15 = sphi %s1621_s15, %s2083_s15  }
   0x9   : > { %p45_p0 = scmp.ne.s32.totalorder %s1575_s16, %s1571_s15  ;;  %p2067_p1 = scmp.eq.s32.totalorder %s1642_s19, 0 }
   0xa   : > { %p96_p3 = scmp.eq.s32.totalorder %s1056_s20, 1  ;;  %p1057_p5 = scmp.ge.s32.totalorder %s1583_s18, 1 }
   0xb   : > { %p1653_p4 = por %p2067_p1, %p45_p0  ;;  %p155_p7 = scmp.lt.s32.totalorder %s1583_s18, 3 }
   0xc   : > { %p1658_p6 = por %p96_p3, %p45_p0  ;;  %s1585_s24 = smov [#allocation5]  }
   0xd   : > { %s2070_s21 = scalar_select %p1653_p4, 1, 0 }
   0xe   : > { %s2071_s22 = scalar_select %p1658_p6, 1, 0 }
   0xf   : > { %p1663_p8 = pnand %p1057_p5, %p155_p7  ;;  %s167_s25 = sshll.u32 %s1585_s24, 4  ;;  %s1667_s25 = int_to_ptr.vmem [resolvable:$true] %s167_s25 }
  0x10   : > { %s1679_s27 = sadd.s32 1, %s1583_s18   ;;  %s32_s28 = sadd.s32 1, %s1579_s17 }
  0x11   : > { %s2072_s23 = scalar_select %p1663_p8, 1, 0 }
  0x12   : > { %p1270_p9 = pneg %p1663_p8  ;;  %s29_s29 = ssub.s32 %s1583_s18, %s1679_s27 }
  0x13   : > { %s1395_s6 = scalar_lea.hbm %s2063_s1, 2048 }
  0x14   : > { %p1674_p11 = pnand %p1270_p9, %p2067_p1  ;;  %p1396_p12 = scmp.ne.s32.totalorder %s2063_s1, %s1395_s6 }
  0x15   : > { %p1402_p5 = scmp.lt.u32.totalorder %s1395_s6, %s2063_s1 }
  0x16   : > { %p1397_p13 = pneg %p1674_p11 }
  0x18   : > { %p1398_p0 = pnand %p1397_p13, %p1396_p12 }
  0x1a   : > { %p1399_p3 = pneg %p1398_p0 }
  0x1c   : > { %p1404_p7 = pnand %p1402_p5, %p1399_p3 }
  0x1e   : > { %1407 = shalt.err (!%p1404_p7)
}
  0x1f   : > { %s1408_s11 = scalar_lea.vmem %s1667_s25, 2048  ;;  %p1416_p2 = scmp.lt.s32.totalorder %s1667_s25, %s1667_s25 }
  0x20   : > { %p1409_p9 = scmp.ne.s32.totalorder %s1667_s25, %s1408_s11  ;;  %p1417_p6 = scmp.lt.s32.totalorder %s1408_s11, %s1408_s11 }
  0x22   : > { %p1411_p10 = pnand %p1409_p9, %p1397_p13  ;;  %p1418_p4 = por %p1417_p6, %p1416_p2 }
  0x24   : > { %p1412_p1 = pneg %p1411_p10 }
  0x26   : > { %p1419_p8 = pnand %p1418_p4, %p1412_p1 }
  0x28   : > { %1422 = shalt.err (!%p1419_p8)
}
  0x29   : > { %s1586_s12 = smov 64   ;;  %s1587_s13 = smov 4  }
  0x2a   : > { %1273 = dma.hbm_to_vmem [thread:$0]  (!%p1674_p11), %s2063_s1, 2048, %s1667_s25, [#allocation6], %s1586_s12, %s1586_s12, %s1587_s13  }
  0x2b   : > { %p30_p2 = scmp.eq.s32.totalorder %s29_s29, 0  ;;  %p39_p1 = scmp.ne.s32.totalorder %s1579_s17, %s1575_s16 }
  0x2c   : > { %p40_p4 = scmp.eq.s32.totalorder %s1583_s18, 0  ;;  %p1289_p6 = scmp.lt.s32.totalorder %s1583_s18, 2 }
  0x2d   : > { %s1710_s30 = scalar_select %p30_p2, %s1579_s17, %s32_s28  }
  0x2e   : > { %p41_p8 = por %p40_p4, %p39_p1  ;;  %p2074_p10 = scmp.eq.s32.totalorder %s1642_s19, 1 }
  0x2f   : > { %s181_s6 = sand.u32 1, %s1579_s17   ;;  %s1128_s7 = sshll.u32 %s1583_s18, 12 }
  0x30   : > { %p1714_p12 = por %p2074_p10, %p39_p1  ;;  %s1060_s8 = sshll.u32 %s181_s6, 8 }
  0x31   : > { %s1723_s10 = scalar_lea.hbm %s2062_s0, %s1128_s7  ;;  %s185_s25 = scalar_lea.vmem [#allocation2], %s1060_s8 }
  0x32   : > { %s193_s28 = sshll.u32 %s185_s25, 4  ;;  %p1725_p11 = pnand %p1289_p6, %p41_p8  ;;  %s1729_s28 = int_to_ptr.vmem [resolvable:$true] %s193_s28 }
  0x33   : > { %s1731_s11 = scalar_lea.sflag [#allocation3], %s181_s6  ;;  %s1423_s12 = scalar_lea.hbm %s1723_s10, 4096 }
  0x34   : > { %p1424_p13 = scmp.ne.s32.totalorder %s1723_s10, %s1423_s12  ;;  %p1425_p0 = pneg %p1725_p11 }
  0x35   : > { %s1428_s24 = scalar_lea.hbm %s2062_s0, 8192  ;;  %p1429_p7 = scmp.lt.u32.totalorder %s1723_s10, %s2062_s0 }
  0x36   : > { %p1426_p3 = pnand %p1425_p0, %p1424_p13  ;;  %p1430_p9 = scmp.lt.u32.totalorder %s1428_s24, %s1423_s12 }
  0x37   : > { %p1432_p1 = scmp.lt.u32.totalorder %s1423_s12, %s1723_s10 }
  0x38   : > { %p1427_p5 = pneg %p1426_p3  ;;  %p1431_p2 = por %p1430_p9, %p1429_p7 }
  0x3a   : > { %p1433_p4 = por %p1432_p1, %p1431_p2 }
  0x3c   : > { %p1434_p6 = pnand %p1433_p4, %p1427_p5 }
  0x3e   : > { %1437 = shalt.err (!%p1434_p6)
}
  0x3f   : > { %s1438_s6 = scalar_lea.vmem %s1729_s28, 4096  ;;  %s1588_s26 = smov [#allocation2]  }
  0x40   : > { %p1439_p8 = scmp.ne.s32.totalorder %s1729_s28, %s1438_s6  ;;  %s1443_s9 = sshll.u32 %s1588_s26, 4  ;;  %s1444_s9 = int_to_ptr.vmem [resolvable:$false] %s1443_s9 }
  0x41   : > { %s1445_s25 = scalar_lea.vmem %s1444_s9, 8192  ;;  %p1446_p3 = scmp.lt.s32.totalorder %s1729_s28, %s1444_s9 }
  0x42   : > { %p1441_p10 = pnand %p1439_p8, %p1425_p0  ;;  %p1447_p7 = scmp.lt.s32.totalorder %s1445_s25, %s1438_s6 }
  0x44   : > { %p1442_p13 = pneg %p1441_p10  ;;  %p1448_p9 = por %p1447_p7, %p1446_p3 }
  0x46   : > { %p1449_p2 = pnand %p1448_p9, %p1442_p13 }
  0x48   : > { %1452 = shalt.err (!%p1449_p2)
}
  0x49   : > { %s1589_s12 = smov 128   ;;  %s1590_s13 = smov 8  }
  0x4a   : > { %1277 = dma.hbm_to_vmem [thread:$0]  (!%p1725_p11), %s1723_s10, 4096, %s1729_s28, %s1731_s11, %s1589_s12, %s1589_s12, %s1590_s13  }
  0x4b   : > { %p2077_p0 = scmp.ne.s32.totalorder %s2072_s23, 0 }
  0x4c   : > { %s1762_s14 = sand.u32 (!%p2077_p0), 1, %s1575_s16   ;;  %p2078_p5 = scmp.ne.s32.totalorder (!%p2077_p0), %s2070_s21, 0 }
  0x4d   : > { %205 = sbr.rel (%p2077_p0) target bundleno = 475 (0x1db), region = 28  ;;  %s1065_s24 = sshll.u32 (!%p2077_p0), %s1762_s14, 8 }
  0x4e   : > { %s208_s7 = scalar_lea.sflag (!%p2077_p0), [#allocation3], %s1762_s14  ;;  %s1768_s8 = scalar_lea.vmem (!%p2077_p0), [#allocation2], %s1065_s24 }
  0x54   : > { %1554 = dma.done.wait (%p2078_p5), %s208_s7, 4096  }
  0x55   : > { %1556 = vsyncadd (%p2078_p5), %s208_s7, 4294963200  ;;  %p2079_p11 = scmp.eq.s32.totalorder %s1642_s19, 0 }
  0x57   : > { %1558 = dma.done.wait (%p2079_p11), [#allocation6], 2048   ;;  %p2080_p1 = pmov %p2079_p11 }
  0x58   : > { %v1331_v0 = vld [vmem:[#allocation5 + $0x40] sm:$0xff]   ;;  %v1333_v2 = vld [vmem:[#allocation5 + $0x48] sm:$0xff]   ;;  %v1335_v4 = vld [vmem:[#allocation5 + $0x50] sm:$0xff]   ;;  %s1814_s21 = scalar_lea.vmem [#allocation7], %s1065_s24  ;;  %s1129_s23 = sshll.u32 %s1642_s19, 12 }
  0x59   : > { %1560 = vsyncadd (%p2080_p1), [#allocation6], 4294965248  ;;  %v1332_v1 = vld [vmem:[#allocation5] sm:$0xff]   ;;  %1130 = vmatprep.subr.bf16.mxu0 %v1331_v0  ;;  %1242 = vmatprep.subr.bf16.mxu1 %v1331_v0  ;;  %v1334_v3 = vld [vmem:[#allocation5 + $0x8] sm:$0xff]   ;;  %s886_s10 = sshll.u32 %s1814_s21, 4  ;;  %s1892_s11 = scalar_lea.hbm %s2064_s2, %s1129_s23  ;;  %s1894_s10 = int_to_ptr.vmem [resolvable:$true] %s886_s10 }
  0x5a   : > { %1131 = vmatpush3.bf16.msra.mxu0 %v1332_v1  ;;  %1250 = vmatpush3.bf16.msra.mxu1 %v1332_v1  ;;  %v1336_v5 = vld [vmem:[#allocation5 + $0x10] sm:$0xff]   ;;  %v1337_v6 = vld [vmem:[#allocation5 + $0x58] sm:$0xff]   ;;  %v1339_v8 = vld [vmem:[#allocation5 + $0x60] sm:$0xff]   ;;  %s863_s6 = scalar_lea.sflag [#allocation4], %s1762_s14  ;;  %s1453_s26 = scalar_lea.vmem %s1894_s10, 4096 }
  0x5b   : > { %1132 = vmatprep.subr.bf16.mxu0 %v1333_v2  ;;  %1243 = vmatprep.subr.bf16.mxu1 %v1333_v2  ;;  %v1338_v7 = vld [vmem:[#allocation5 + $0x18] sm:$0xff]   ;;  %v1340_v9 = vld [vmem:[#allocation5 + $0x20] sm:$0xff]   ;;  %v1341_v10 = vld [vmem:[#allocation5 + $0x68] sm:$0xff]   ;;  %p1454_p4 = scmp.ne.s32.totalorder %s1894_s10, %s1453_s26  ;;  %s1591_s9 = smov [#allocation7]  }
  0x5c   : > { %v1349_v11 = vld [vmem:[%s1768_s8 + $0x4] ss:$8 sps:$4 sm:$0xff]   ;;  %v1343_v13 = vld [vmem:[#allocation5 + $0x70] sm:$0xff]   ;;  %v1345_v16 = vld [vmem:[#allocation5 + $0x78] sm:$0xff]   ;;  %s1457_s25 = sshll.u32 %s1591_s9, 4  ;;  %s1458_s25 = int_to_ptr.vmem [resolvable:$false] %s1457_s25 }
  0x5d   : > { %v1342_v12 = vld [vmem:[#allocation5 + $0x28] sm:$0xff]   ;;  %605 = vmatprep.mubr.bf16.mxu0 %v1349_v11  ;;  %v1344_v15 = vld [vmem:[#allocation5 + $0x30] sm:$0xff]   ;;  %v1346_v17 = vld [vmem:[#allocation5 + $0x38] sm:$0xff]   ;;  %p1455_p6 = pnand %p1454_p4, %p1714_p12  ;;  %s1459_s12 = scalar_lea.vmem %s1458_s25, 8192 }
  0x5e   : > { %1133 = vmatpush3.bf16.msra.mxu0 %v1334_v3  ;;  %1251 = vmatpush3.bf16.msra.mxu1 %v1334_v3  ;;  %v1361_v14 = vld [vmem:[%s1768_s8 + $0x84] ss:$8 sps:$4 sm:$0xff]   ;;  %v1347_v18 = vld [vmem:[%s1768_s8] ss:$8 sps:$4 sm:$0xff]   ;;  %v1350_v19 = vld [vmem:[%s1768_s8 + $0x14] ss:$8 sps:$4 sm:$0xff]   ;;  %p1460_p10 = scmp.lt.s32.totalorder %s1894_s10, %s1458_s25  ;;  %p1461_p13 = scmp.lt.s32.totalorder %s1459_s12, %s1453_s26 }
  0x5f   : > { %1134 = vmatprep.subr.bf16.mxu0 %v1335_v4  ;;  %1244 = vmatprep.subr.bf16.mxu1 %v1335_v4  ;;  %v1359_v20 = vld [vmem:[%s1768_s8 + $0x80] ss:$8 sps:$4 sm:$0xff]   ;;  %v1365_v21 = vld [vmem:[%s1768_s8 + $0x94] ss:$8 sps:$4 sm:$0xff]   ;;  %v1352_v22 = vld [vmem:[%s1768_s8 + $0x10] ss:$8 sps:$4 sm:$0xff]   ;;  %p1456_p8 = pneg %p1455_p6 }
  0x60   : > { %669 = vmatprep.mubr.bf16.mxu1 %v1361_v14  ;;  %v1353_v23 = vld [vmem:[%s1768_s8 + $0x24] ss:$8 sps:$4 sm:$0xff]   ;;  %v1367_v24 = vld [vmem:[%s1768_s8 + $0x90] ss:$8 sps:$4 sm:$0xff]   ;;  %v1355_v26 = vld [vmem:[%s1768_s8 + $0x20] ss:$8 sps:$4 sm:$0xff]   ;;  %p1462_p3 = por %p1461_p13, %p1460_p10 }
  0x61   : > { %v1371_v25 = vld [vmem:[%s1768_s8 + $0xa4] ss:$8 sps:$4 sm:$0xff]   ;;  %v1356_v27 = vld [vmem:[%s1768_s8 + $0x34] ss:$8 sps:$4 sm:$0xff]   ;;  %v1373_v28 = vld [vmem:[%s1768_s8 + $0xa0] ss:$8 sps:$4 sm:$0xff]  }
  0x62   : > { %1135 = vmatpush3.bf16.msra.mxu0 %v1336_v5  ;;  %1252 = vmatpush3.bf16.msra.mxu1 %v1336_v5  ;;  %v1377_v29 = vld [vmem:[%s1768_s8 + $0xb4] ss:$8 sps:$4 sm:$0xff]   ;;  %v1358_v30 = vld [vmem:[%s1768_s8 + $0x30] ss:$8 sps:$4 sm:$0xff]   ;;  %v1362_v31 = vld [vmem:[%s1768_s8 + $0x44] ss:$8 sps:$4 sm:$0xff]   ;;  %p1463_p7 = pnand %p1462_p3, %p1456_p8 }
  0x63   : > { %1136 = vmatprep.subr.bf16.mxu0 %v1337_v6  ;;  %1245 = vmatprep.subr.bf16.mxu1 %v1337_v6  ;;  %v1379_v32 = vld [vmem:[%s1768_s8 + $0xb0] ss:$8 sps:$4 sm:$0xff]   ;;  %v1383_v33 = vld [vmem:[%s1768_s8 + $0xc4] ss:$8 sps:$4 sm:$0xff]   ;;  %v1364_v34 = vld [vmem:[%s1768_s8 + $0x40] ss:$8 sps:$4 sm:$0xff]  }
  0x64   : > { %v1368_v35 = vld [vmem:[%s1768_s8 + $0x54] ss:$8 sps:$4 sm:$0xff]   ;;  %v1385_v36 = vld [vmem:[%s1768_s8 + $0xc0] ss:$8 sps:$4 sm:$0xff]   ;;  %v1370_v38 = vld [vmem:[%s1768_s8 + $0x50] ss:$8 sps:$4 sm:$0xff]  }
  0x65   : > { %v1386_v37 = vld [vmem:[%s1768_s8 + $0xd4] ss:$8 sps:$4 sm:$0xff]   ;;  %v1374_v39 = vld [vmem:[%s1768_s8 + $0x64] ss:$8 sps:$4 sm:$0xff]   ;;  %v1388_v40 = vld [vmem:[%s1768_s8 + $0xd0] ss:$8 sps:$4 sm:$0xff]  }
  0x66   : > { %1137 = vmatpush3.bf16.msra.mxu0 %v1338_v7  ;;  %1253 = vmatpush3.bf16.msra.mxu1 %v1338_v7  ;;  %v1389_v41 = vld [vmem:[%s1768_s8 + $0xe4] ss:$8 sps:$4 sm:$0xff]   ;;  %v1376_v42 = vld [vmem:[%s1768_s8 + $0x60] ss:$8 sps:$4 sm:$0xff]   ;;  %v1380_v43 = vld [vmem:[%s1768_s8 + $0x74] ss:$8 sps:$4 sm:$0xff]  }
  0x67   : > { %1138 = vmatprep.subr.bf16.mxu0 %v1339_v8  ;;  %1246 = vmatprep.subr.bf16.mxu1 %v1339_v8  ;;  %v1391_v44 = vld [vmem:[%s1768_s8 + $0xe0] ss:$8 sps:$4 sm:$0xff]   ;;  %v1392_v45 = vld [vmem:[%s1768_s8 + $0xf4] ss:$8 sps:$4 sm:$0xff]   ;;  %v1382_v46 = vld [vmem:[%s1768_s8 + $0x70] ss:$8 sps:$4 sm:$0xff]  }
  0x68   : > { %v1394_v47 = vld [vmem:[%s1768_s8 + $0xf0] ss:$8 sps:$4 sm:$0xff]  }
  0x6a   : > { %1139 = vmatpush3.bf16.msra.mxu0 %v1340_v9  ;;  %1254 = vmatpush3.bf16.msra.mxu1 %v1340_v9 }
  0x6b   : > { %1140 = vmatprep.subr.bf16.mxu0 %v1341_v10  ;;  %1247 = vmatprep.subr.bf16.mxu1 %v1341_v10 }
  0x6e   : > { %1141 = vmatpush3.bf16.msra.mxu0 %v1342_v12  ;;  %1255 = vmatpush3.bf16.msra.mxu1 %v1342_v12 }
  0x6f   : > { %1142 = vmatprep.subr.bf16.mxu0 %v1343_v13  ;;  %1248 = vmatprep.subr.bf16.mxu1 %v1343_v13 }
  0x72   : > { %1143 = vmatpush3.bf16.msra.mxu0 %v1344_v15  ;;  %1256 = vmatpush3.bf16.msra.mxu1 %v1344_v15 }
  0x73   : > { %1144 = vmatprep.subr.bf16.mxu0 %v1345_v16  ;;  %1249 = vmatprep.subr.bf16.mxu1 %v1345_v16 }
  0x76   : > { %1145 = vmatpush3.bf16.msra.mxu0 %v1346_v17  ;;  %1257 = vmatpush3.bf16.msra.mxu1 %v1346_v17 }
  0x79   : > { %606 = vmatmul.mubr.bf16.vlgmr.msra.gmra.mrb[0].mxu0 %v1347_v18  ;;  %670 = vmatmul.mubr.bf16.vlgmr.msra.gmra.mrb[0].mxu1 %v1359_v20 }
  0x7a   : > { %613 = vmatprep.mubr.bf16.mxu0 %v1350_v19  ;;  %677 = vmatprep.mubr.bf16.mxu1 %v1365_v21 }
  0x81   : > { %614 = vmatmul.mubr.bf16.gmra.mrb[4].mxu0 %v1352_v22  ;;  %678 = vmatmul.mubr.bf16.gmra.mrb[4].mxu1 %v1367_v24 }
  0x82   : > { %621 = vmatprep.mubr.bf16.mxu0 %v1353_v23  ;;  %685 = vmatprep.mubr.bf16.mxu1 %v1371_v25 }
  0x89   : > { %622 = vmatmul.mubr.bf16.gmra.mrb[8].mxu0 %v1355_v26  ;;  %686 = vmatmul.mubr.bf16.gmra.mrb[8].mxu1 %v1373_v28 }
  0x8a   : > { %629 = vmatprep.mubr.bf16.mxu0 %v1356_v27  ;;  %693 = vmatprep.mubr.bf16.mxu1 %v1377_v29 }
  0x91   : > { %630 = vmatmul.mubr.bf16.gmra.mrb[12].mxu0 %v1358_v30  ;;  %694 = vmatmul.mubr.bf16.gmra.mrb[12].mxu1 %v1379_v32 }
  0x92   : > { %637 = vmatprep.mubr.bf16.mxu0 %v1362_v31  ;;  %701 = vmatprep.mubr.bf16.mxu1 %v1383_v33 }
  0x99   : > { %638 = vmatmul.mubr.bf16.gmra.mrb[16].mxu0 %v1364_v34  ;;  %702 = vmatmul.mubr.bf16.gmra.mrb[16].mxu1 %v1385_v36 }
  0x9a   : > { %645 = vmatprep.mubr.bf16.mxu0 %v1368_v35  ;;  %709 = vmatprep.mubr.bf16.mxu1 %v1386_v37 }
  0xa1   : > { %646 = vmatmul.mubr.bf16.gmra.mrb[20].mxu0 %v1370_v38  ;;  %710 = vmatmul.mubr.bf16.gmra.mrb[20].mxu1 %v1388_v40 }
  0xa2   : > { %653 = vmatprep.mubr.bf16.mxu0 %v1374_v39  ;;  %717 = vmatprep.mubr.bf16.mxu1 %v1389_v41 }
  0xa9   : > { %654 = vmatmul.mubr.bf16.gmra.mrb[24].mxu0 %v1376_v42  ;;  %718 = vmatmul.mubr.bf16.gmra.mrb[24].mxu1 %v1391_v44 }
  0xaa   : > { %661 = vmatprep.mubr.bf16.mxu0 %v1380_v43  ;;  %725 = vmatprep.mubr.bf16.mxu1 %v1392_v45 }
  0xb1   : > { %662 = vmatmul.mubr.bf16.gmra.mrb[28].mxu0 %v1382_v46  ;;  %726 = vmatmul.mubr.bf16.gmra.mrb[28].mxu1 %v1394_v47 }
 0x14c   : > { %v1146_v48 = vpop.f32.mrb[0].mxu0  ;;  %v1194_v50 = vpop.f32.mrb[0].mxu1 }
 0x14d   : > { %v1147_v49 = vpop.f32.mrb[1].mxu0  ;;  %v1195_v53 = vpop.f32.mrb[1].mxu1 }
 0x14e   : > { %v1148_v51 = vadd.f32 %v1147_v49, %v1146_v48  ;;  %v1149_v52 = vpop.f32.mrb[2].mxu0  ;;  %v1810_v55 = vadd.f32 %v1195_v53, %v1194_v50  ;;  %v1197_v56 = vpop.f32.mrb[2].mxu1 }
 0x14f   : > { %v1150_v54 = vpop.f32.mrb[3].mxu0  ;;  %v1198_v58 = vpop.f32.mrb[3].mxu1 }
 0x150   : > { %734 = vst [vmem:[%s1814_s21] sm:$0xff] %v1148_v51  ;;  %v1151_v57 = vadd.f32 %v1150_v54, %v1149_v52  ;;  %750 = vst [vmem:[%s1814_s21 + $0x80] sm:$0xff] %v1810_v55  ;;  %v1819_v59 = vadd.f32 %v1198_v58, %v1197_v56  ;;  %v798_v60 = vmul.f32 %v1148_v51, %v1148_v51 }
 0x152   : > { %735 = vst [vmem:[%s1814_s21 + $0x8] sm:$0xff] %v1151_v57  ;;  %v766_v61 = vadd.f32 %v1151_v57, %v1148_v51  ;;  %v799_v62 = vmul.f32 %v1151_v57, %v1151_v57  ;;  %751 = vst [vmem:[%s1814_s21 + $0x88] sm:$0xff] %v1819_v59 }
 0x154   : > { %v830_v63 = vadd.f32 %v799_v62, %v798_v60  ;;  %v1152_v0 = vpop.f32.mrb[4].mxu0  ;;  %v1200_v2 = vpop.f32.mrb[4].mxu1 }
 0x155   : > { %v1153_v1 = vpop.f32.mrb[5].mxu0  ;;  %v1201_v5 = vpop.f32.mrb[5].mxu1 }
 0x156   : > { %v1154_v3 = vadd.f32 %v1153_v1, %v1152_v0  ;;  %v1155_v4 = vpop.f32.mrb[6].mxu0  ;;  %v1824_v7 = vadd.f32 %v1201_v5, %v1200_v2  ;;  %v1203_v8 = vpop.f32.mrb[6].mxu1 }
 0x157   : > { %v1156_v6 = vpop.f32.mrb[7].mxu0  ;;  %v1204_v12 = vpop.f32.mrb[7].mxu1 }
 0x158   : > { %736 = vst [vmem:[%s1814_s21 + $0x10] sm:$0xff] %v1154_v3  ;;  %v767_v9 = vadd.f32 %v1154_v3, %v766_v61  ;;  %v800_v10 = vmul.f32 %v1154_v3, %v1154_v3  ;;  %v1157_v11 = vadd.f32 %v1156_v6, %v1155_v4  ;;  %752 = vst [vmem:[%s1814_s21 + $0x90] sm:$0xff] %v1824_v7 }
 0x159   : > { %v1829_v13 = vadd.f32 %v1204_v12, %v1203_v8 }
 0x15a   : > { %v831_v14 = vadd.f32 %v830_v63, %v800_v10  ;;  %737 = vst [vmem:[%s1814_s21 + $0x18] sm:$0xff] %v1157_v11  ;;  %v768_v15 = vadd.f32 %v1157_v11, %v767_v9  ;;  %v801_v16 = vmul.f32 %v1157_v11, %v1157_v11 }
 0x15b   : > { %753 = vst [vmem:[%s1814_s21 + $0x98] sm:$0xff] %v1829_v13 }
 0x15c   : > { %v832_v17 = vadd.f32 %v831_v14, %v801_v16  ;;  %v1158_v18 = vpop.f32.mrb[8].mxu0  ;;  %v1206_v20 = vpop.f32.mrb[8].mxu1 }
 0x15d   : > { %v1159_v19 = vpop.f32.mrb[9].mxu0  ;;  %v1207_v23 = vpop.f32.mrb[9].mxu1 }
 0x15e   : > { %v1160_v21 = vadd.f32 %v1159_v19, %v1158_v18  ;;  %v1161_v22 = vpop.f32.mrb[10].mxu0  ;;  %v1834_v25 = vadd.f32 %v1207_v23, %v1206_v20  ;;  %v1209_v26 = vpop.f32.mrb[10].mxu1 }
 0x15f   : > { %v1162_v24 = vpop.f32.mrb[11].mxu0  ;;  %v1210_v30 = vpop.f32.mrb[11].mxu1 }
 0x160   : > { %738 = vst [vmem:[%s1814_s21 + $0x20] sm:$0xff] %v1160_v21  ;;  %v769_v27 = vadd.f32 %v1160_v21, %v768_v15  ;;  %v802_v28 = vmul.f32 %v1160_v21, %v1160_v21  ;;  %v1163_v29 = vadd.f32 %v1162_v24, %v1161_v22  ;;  %754 = vst [vmem:[%s1814_s21 + $0xa0] sm:$0xff] %v1834_v25 }
 0x161   : > { %v1839_v31 = vadd.f32 %v1210_v30, %v1209_v26 }
 0x162   : > { %v833_v32 = vadd.f32 %v832_v17, %v802_v28  ;;  %739 = vst [vmem:[%s1814_s21 + $0x28] sm:$0xff] %v1163_v29  ;;  %v770_v33 = vadd.f32 %v1163_v29, %v769_v27  ;;  %v803_v34 = vmul.f32 %v1163_v29, %v1163_v29 }
 0x163   : > { %755 = vst [vmem:[%s1814_s21 + $0xa8] sm:$0xff] %v1839_v31 }
 0x164   : > { %v834_v35 = vadd.f32 %v833_v32, %v803_v34  ;;  %v1164_v36 = vpop.f32.mrb[12].mxu0  ;;  %v1212_v38 = vpop.f32.mrb[12].mxu1 }
 0x165   : > { %v1165_v37 = vpop.f32.mrb[13].mxu0  ;;  %v1213_v41 = vpop.f32.mrb[13].mxu1 }
 0x166   : > { %v1166_v39 = vadd.f32 %v1165_v37, %v1164_v36  ;;  %v1167_v40 = vpop.f32.mrb[14].mxu0  ;;  %v1844_v43 = vadd.f32 %v1213_v41, %v1212_v38  ;;  %v1215_v44 = vpop.f32.mrb[14].mxu1 }
 0x167   : > { %v1168_v42 = vpop.f32.mrb[15].mxu0  ;;  %v1216_v48 = vpop.f32.mrb[15].mxu1 }
 0x168   : > { %740 = vst [vmem:[%s1814_s21 + $0x30] sm:$0xff] %v1166_v39  ;;  %v771_v45 = vadd.f32 %v1166_v39, %v770_v33  ;;  %v804_v46 = vmul.f32 %v1166_v39, %v1166_v39  ;;  %v1169_v47 = vadd.f32 %v1168_v42, %v1167_v40  ;;  %756 = vst [vmem:[%s1814_s21 + $0xb0] sm:$0xff] %v1844_v43 }
 0x169   : > { %v1849_v49 = vadd.f32 %v1216_v48, %v1215_v44 }
 0x16a   : > { %v835_v50 = vadd.f32 %v834_v35, %v804_v46  ;;  %741 = vst [vmem:[%s1814_s21 + $0x38] sm:$0xff] %v1169_v47  ;;  %v772_v51 = vadd.f32 %v1169_v47, %v771_v45  ;;  %v805_v52 = vmul.f32 %v1169_v47, %v1169_v47 }
 0x16b   : > { %757 = vst [vmem:[%s1814_s21 + $0xb8] sm:$0xff] %v1849_v49 }
 0x16c   : > { %v836_v53 = vadd.f32 %v835_v50, %v805_v52  ;;  %v1170_v54 = vpop.f32.mrb[16].mxu0  ;;  %v1218_v57 = vpop.f32.mrb[16].mxu1 }
 0x16d   : > { %v1171_v56 = vpop.f32.mrb[17].mxu0  ;;  %v1219_v61 = vpop.f32.mrb[17].mxu1 }
 0x16e   : > { %v1172_v58 = vadd.f32 %v1171_v56, %v1170_v54  ;;  %v1173_v60 = vpop.f32.mrb[18].mxu0  ;;  %v1854_v63 = vadd.f32 %v1219_v61, %v1218_v57  ;;  %v1221_v0 = vpop.f32.mrb[18].mxu1 }
 0x16f   : > { %v1174_v62 = vpop.f32.mrb[19].mxu0  ;;  %v1222_v4 = vpop.f32.mrb[19].mxu1 }
 0x170   : > { %742 = vst [vmem:[%s1814_s21 + $0x40] sm:$0xff] %v1172_v58  ;;  %v773_v1 = vadd.f32 %v1172_v58, %v772_v51  ;;  %v806_v2 = vmul.f32 %v1172_v58, %v1172_v58  ;;  %v1175_v3 = vadd.f32 %v1174_v62, %v1173_v60  ;;  %758 = vst [vmem:[%s1814_s21 + $0xc0] sm:$0xff] %v1854_v63 }
 0x171   : > { %v1859_v5 = vadd.f32 %v1222_v4, %v1221_v0 }
 0x172   : > { %v837_v6 = vadd.f32 %v836_v53, %v806_v2  ;;  %743 = vst [vmem:[%s1814_s21 + $0x48] sm:$0xff] %v1175_v3  ;;  %v774_v8 = vadd.f32 %v1175_v3, %v773_v1  ;;  %v807_v9 = vmul.f32 %v1175_v3, %v1175_v3 }
 0x173   : > { %759 = vst [vmem:[%s1814_s21 + $0xc8] sm:$0xff] %v1859_v5 }
 0x174   : > { %v838_v10 = vadd.f32 %v837_v6, %v807_v9  ;;  %v1176_v11 = vpop.f32.mrb[20].mxu0  ;;  %v1224_v14 = vpop.f32.mrb[20].mxu1 }
 0x175   : > { %v1177_v12 = vpop.f32.mrb[21].mxu0  ;;  %v1225_v17 = vpop.f32.mrb[21].mxu1 }
 0x176   : > { %v1178_v15 = vadd.f32 %v1177_v12, %v1176_v11  ;;  %v1179_v16 = vpop.f32.mrb[22].mxu0  ;;  %v1864_v19 = vadd.f32 %v1225_v17, %v1224_v14  ;;  %v1227_v20 = vpop.f32.mrb[22].mxu1 }
 0x177   : > { %v1180_v18 = vpop.f32.mrb[23].mxu0  ;;  %v1228_v24 = vpop.f32.mrb[23].mxu1 }
 0x178   : > { %744 = vst [vmem:[%s1814_s21 + $0x50] sm:$0xff] %v1178_v15  ;;  %v775_v21 = vadd.f32 %v1178_v15, %v774_v8  ;;  %v808_v22 = vmul.f32 %v1178_v15, %v1178_v15  ;;  %v1181_v23 = vadd.f32 %v1180_v18, %v1179_v16  ;;  %760 = vst [vmem:[%s1814_s21 + $0xd0] sm:$0xff] %v1864_v19 }
 0x179   : > { %v1869_v26 = vadd.f32 %v1228_v24, %v1227_v20 }
 0x17a   : > { %v839_v27 = vadd.f32 %v838_v10, %v808_v22  ;;  %745 = vst [vmem:[%s1814_s21 + $0x58] sm:$0xff] %v1181_v23  ;;  %v776_v28 = vadd.f32 %v1181_v23, %v775_v21  ;;  %v809_v29 = vmul.f32 %v1181_v23, %v1181_v23  ;;  %v814_v10 = vmul.f32 %v1810_v55, %v1810_v55 }
 0x17b   : > { %761 = vst [vmem:[%s1814_s21 + $0xd8] sm:$0xff] %v1869_v26 }
 0x17c   : > { %v840_v30 = vadd.f32 %v839_v27, %v809_v29  ;;  %v1182_v32 = vpop.f32.mrb[24].mxu0  ;;  %v1230_v34 = vpop.f32.mrb[24].mxu1 }
 0x17d   : > { %v1183_v33 = vpop.f32.mrb[25].mxu0  ;;  %v1231_v37 = vpop.f32.mrb[25].mxu1 }
 0x17e   : > { %v1184_v35 = vadd.f32 %v1183_v33, %v1182_v32  ;;  %v1185_v36 = vpop.f32.mrb[26].mxu0  ;;  %v1874_v39 = vadd.f32 %v1231_v37, %v1230_v34  ;;  %v1233_v40 = vpop.f32.mrb[26].mxu1 }
 0x17f   : > { %v1186_v38 = vpop.f32.mrb[27].mxu0  ;;  %v1234_v45 = vpop.f32.mrb[27].mxu1 }
 0x180   : > { %746 = vst [vmem:[%s1814_s21 + $0x60] sm:$0xff] %v1184_v35  ;;  %v777_v41 = vadd.f32 %v1184_v35, %v776_v28  ;;  %v810_v42 = vmul.f32 %v1184_v35, %v1184_v35  ;;  %v1187_v44 = vadd.f32 %v1186_v38, %v1185_v36  ;;  %762 = vst [vmem:[%s1814_s21 + $0xe0] sm:$0xff] %v1874_v39 }
 0x181   : > { %v1879_v46 = vadd.f32 %v1234_v45, %v1233_v40 }
 0x182   : > { %v841_v47 = vadd.f32 %v840_v30, %v810_v42  ;;  %747 = vst [vmem:[%s1814_s21 + $0x68] sm:$0xff] %v1187_v44  ;;  %v778_v48 = vadd.f32 %v1187_v44, %v777_v41  ;;  %v811_v50 = vmul.f32 %v1187_v44, %v1187_v44 }
 0x183   : > { %763 = vst [vmem:[%s1814_s21 + $0xe8] sm:$0xff] %v1879_v46 }
 0x184   : > { %v842_v51 = vadd.f32 %v841_v47, %v811_v50  ;;  %v1188_v52 = vpop.f32.mrb[28].mxu0  ;;  %v1236_v54 = vpop.f32.mrb[28].mxu1 }
 0x185   : > { %v1189_v53 = vpop.f32.mrb[29].mxu0  ;;  %v1237_v58 = vpop.f32.mrb[29].mxu1 }
 0x186   : > { %v1190_v56 = vadd.f32 %v1189_v53, %v1188_v52  ;;  %v1191_v57 = vpop.f32.mrb[30].mxu0  ;;  %v1886_v61 = vadd.f32 %v1237_v58, %v1236_v54  ;;  %v1239_v62 = vpop.f32.mrb[30].mxu1 }
 0x187   : > { %v1192_v60 = vpop.f32.mrb[31].mxu0  ;;  %v1240_v3 = vpop.f32.mrb[31].mxu1 }
 0x188   : > { %748 = vst [vmem:[%s1814_s21 + $0x70] sm:$0xff] %v1190_v56  ;;  %v779_v0 = vadd.f32 %v1190_v56, %v778_v48  ;;  %v812_v1 = vmul.f32 %v1190_v56, %v1190_v56  ;;  %v1193_v2 = vadd.f32 %v1192_v60, %v1191_v57  ;;  %764 = vst [vmem:[%s1814_s21 + $0xf0] sm:$0xff] %v1886_v61 }
 0x189   : > { %v1898_v4 = vadd.f32 %v1240_v3, %v1239_v62 }
 0x18a   : > { %v843_v6 = vadd.f32 %v842_v51, %v812_v1  ;;  %749 = vst [vmem:[%s1814_s21 + $0x78] sm:$0xff] %v1193_v2  ;;  %v780_v8 = vadd.f32 %v1193_v2, %v779_v0  ;;  %v813_v9 = vmul.f32 %v1193_v2, %v1193_v2 }
 0x18b   : > { %765 = vst [vmem:[%s1814_s21 + $0xf8] sm:$0xff] %v1898_v4 }
 0x18c   : > { %v781_v11 = vadd.f32 %v1810_v55, %v780_v8  ;;  %v844_v12 = vadd.f32 %v843_v6, %v813_v9 }
 0x18d   : > { %1466 = shalt.err (!%p1463_p7)
}
 0x18e   : > { %s1467_s13 = scalar_lea.hbm %s1892_s11, 4096  ;;  %s1471_s8 = scalar_lea.hbm %s2064_s2, 8192 }
 0x18f   : > { %p1468_p9 = scmp.ne.s32.totalorder %s1892_s11, %s1467_s13  ;;  %p1472_p5 = scmp.lt.u32.totalorder %s1892_s11, %s2064_s2 }
 0x190   : > { %p1473_p11 = scmp.lt.u32.totalorder %s1471_s8, %s1467_s13  ;;  %p1475_p4 = scmp.lt.u32.totalorder %s1467_s13, %s1892_s11 }
 0x191   : > { %p1469_p2 = pnand %p1468_p9, %p1714_p12 }
 0x192   : > { %p1474_p1 = por %p1473_p11, %p1472_p5 }
 0x193   : > { %p1470_p0 = pneg %p1469_p2 }
 0x194   : > { %p1476_p6 = por %p1475_p4, %p1474_p1 }
 0x196   : > { %p1477_p8 = pnand %p1476_p6, %p1470_p0 }
 0x198   : > { %1480 = shalt.err (!%p1477_p8)
}
 0x199   : > { %s1592_s28 = smov 128   ;;  %s1593_s29 = smov 8   ;;  %v815_v55 = vmul.f32 %v1819_v59, %v1819_v59  ;;  %v782_v14 = vadd.f32 %v1819_v59, %v781_v11  ;;  %v845_v15 = vadd.f32 %v844_v12, %v814_v10  ;;  %v816_v16 = vmul.f32 %v1824_v7, %v1824_v7 }
 0x19a   : > { %1264 = dma.vmem_to_hbm [thread:$0]  (%p1714_p12), %s1894_s10, 4096, %s1892_s11, %s863_s6, %s1592_s28, %s1592_s28, %s1593_s29   ;;  %v817_v20 = vmul.f32 %v1829_v13, %v1829_v13  ;;  %v818_v23 = vmul.f32 %v1834_v25, %v1834_v25  ;;  %v819_v59 = vmul.f32 %v1839_v31, %v1839_v31  ;;  %v821_v32 = vmul.f32 %v1849_v49, %v1849_v49 }
 0x19b   : > { %v783_v17 = vadd.f32 %v1824_v7, %v782_v14  ;;  %v846_v18 = vadd.f32 %v845_v15, %v815_v55  ;;  %v820_v7 = vmul.f32 %v1844_v43, %v1844_v43  ;;  %v822_v35 = vmul.f32 %v1854_v63, %v1854_v63  ;;  %s1068_s10 = sshll.u32 %s1762_s14, 3  ;;  %s867_s14 = sand.u32 1, %s1642_s19  }
 0x19c   : > { %v827_v50 = vmul.f32 %v1879_v46, %v1879_v46  ;;  %s1123_s11 = sshll.u32 %s1642_s19, 7  ;;  %s242_s6 = scalar_lea.vmem [#allocation8], %s1068_s10 }
 0x19d   : > { %v784_v21 = vadd.f32 %v1829_v13, %v783_v17  ;;  %v847_v22 = vadd.f32 %v846_v18, %v816_v16  ;;  %s902_s26 = sshll.u32 %s242_s6, 4  ;;  %s1975_s9 = scalar_lea.vmem [#allocation10], %s1068_s10  ;;  %s1986_s26 = int_to_ptr.vmem [resolvable:$true] %s902_s26 }
 0x19e   : > { %s915_s25 = sshll.u32 %s1975_s9, 4  ;;  %s1984_s19 = scalar_lea.hbm %s2065_s3, %s1123_s11  ;;  %s1993_s25 = int_to_ptr.vmem [resolvable:$true] %s915_s25 }
 0x19f   : > { %v848_v24 = vadd.f32 %v847_v22, %v817_v20  ;;  %v785_v27 = vadd.f32 %v1834_v25, %v784_v21  ;;  %s1991_s8 = scalar_lea.hbm %s2066_s4, %s1123_s11  ;;  %s1995_s21 = scalar_lea.sflag [#allocation9], %s867_s14 }
 0x1a0   : > { %s1481_s23 = scalar_lea.vmem %s1986_s26, 128  ;;  %s1594_s28 = smov [#allocation8]  }
 0x1a1   : > { %v786_v28 = vadd.f32 %v1839_v31, %v785_v27  ;;  %v849_v29 = vadd.f32 %v848_v24, %v818_v23  ;;  %p1482_p10 = scmp.ne.s32.totalorder %s1986_s26, %s1481_s23  ;;  %s1485_s29 = sshll.u32 %s1594_s28, 4  ;;  %s1486_s29 = int_to_ptr.vmem [resolvable:$false] %s1485_s29 }
 0x1a2   : > { %s1487_s10 = scalar_lea.vmem %s1486_s29, 256  ;;  %p1488_p7 = scmp.lt.s32.totalorder %s1986_s26, %s1486_s29 }
 0x1a3   : > { %v787_v30 = vadd.f32 %v1844_v43, %v786_v28  ;;  %v850_v13 = vadd.f32 %v849_v29, %v819_v59  ;;  %v823_v43 = vmul.f32 %v1859_v5, %v1859_v5  ;;  %p1483_p13 = pnand %p1482_p10, %p1714_p12  ;;  %p1489_p9 = scmp.lt.s32.totalorder %s1487_s10, %s1481_s23 }
 0x1a5   : > { %v788_v33 = vadd.f32 %v1849_v49, %v787_v30  ;;  %v851_v34 = vadd.f32 %v850_v13, %v820_v7  ;;  %v824_v49 = vmul.f32 %v1864_v19, %v1864_v19  ;;  %p1484_p3 = pneg %p1483_p13  ;;  %p1490_p2 = por %p1489_p9, %p1488_p7 }
 0x1a7   : > { %v789_v25 = vadd.f32 %v1854_v63, %v788_v33  ;;  %v852_v31 = vadd.f32 %v851_v34, %v821_v32  ;;  %v825_v63 = vmul.f32 %v1869_v26, %v1869_v26  ;;  %p1491_p0 = pnand %p1490_p2, %p1484_p3 }
 0x1a9   : > { %v853_v36 = vadd.f32 %v852_v31, %v822_v35  ;;  %v790_v37 = vadd.f32 %v1859_v5, %v789_v25  ;;  %v826_v5 = vmul.f32 %v1874_v39, %v1874_v39 }
 0x1ab   : > { %v854_v38 = vadd.f32 %v853_v36, %v823_v43  ;;  %v791_v40 = vadd.f32 %v1864_v19, %v790_v37  ;;  %v828_v19 = vmul.f32 %v1886_v61, %v1886_v61 }
 0x1ad   : > { %v855_v41 = vadd.f32 %v854_v38, %v824_v49  ;;  %v792_v42 = vadd.f32 %v1869_v26, %v791_v40 }
 0x1af   : > { %v856_v44 = vadd.f32 %v855_v41, %v825_v63  ;;  %v793_v45 = vadd.f32 %v1874_v39, %v792_v42 }
 0x1b1   : > { %v857_v47 = vadd.f32 %v856_v44, %v826_v5  ;;  %v794_v48 = vadd.f32 %v1879_v46, %v793_v45  ;;  %v829_v46 = vmul.f32 %v1898_v4, %v1898_v4 }
 0x1b3   : > { %v858_v26 = vadd.f32 %v857_v47, %v827_v50  ;;  %v795_v51 = vadd.f32 %v1886_v61, %v794_v48 }
 0x1b5   : > { %v859_v39 = vadd.f32 %v858_v26, %v828_v19  ;;  %v796_v52 = vadd.f32 %v1898_v4, %v795_v51 }
 0x1b7   : > { %v860_v53 = vadd.f32 %v859_v39, %v829_v46  ;;  %797 = vst [vmem:[%s242_s6] sm:$0xff] %v796_v52 }
 0x1b8   : > { %1494 = shalt.err (!%p1491_p0)
}
 0x1b9   : > { %s1495_s14 = scalar_lea.hbm %s1984_s19, 128  ;;  %s1499_s12 = scalar_lea.hbm %s2065_s3, 256 }
 0x1ba   : > { %p1496_p5 = scmp.ne.s32.totalorder %s1984_s19, %s1495_s14  ;;  %p1500_p4 = scmp.lt.u32.totalorder %s1984_s19, %s2065_s3 }
 0x1bb   : > { %p1501_p6 = scmp.lt.u32.totalorder %s1499_s12, %s1495_s14  ;;  %p1503_p10 = scmp.lt.u32.totalorder %s1495_s14, %s1984_s19 }
 0x1bc   : > { %p1497_p11 = pnand %p1496_p5, %p1714_p12 }
 0x1bd   : > { %p1502_p8 = por %p1501_p6, %p1500_p4 }
 0x1be   : > { %p1498_p1 = pneg %p1497_p11 }
 0x1bf   : > { %p1504_p13 = por %p1503_p10, %p1502_p8 }
 0x1c1   : > { %p1505_p3 = pnand %p1504_p13, %p1498_p1 }
 0x1c3   : > { %1508 = shalt.err (!%p1505_p3)
}
 0x1c4   : > { %1265 = dma.vmem_to_hbm [thread:$0]  (%p1714_p12), %s1986_s26, 128, %s1984_s19, %s1995_s21   ;;  %861 = vst [vmem:[%s1975_s9] sm:$0xff] %v860_v53 }
 0x1c5   : > { %s1509_s7 = scalar_lea.vmem %s1993_s25, 128  ;;  %s1595_s23 = smov [#allocation10]  }
 0x1c6   : > { %p1510_p7 = scmp.ne.s32.totalorder %s1993_s25, %s1509_s7  ;;  %s1513_s28 = sshll.u32 %s1595_s23, 4  ;;  %s1514_s28 = int_to_ptr.vmem [resolvable:$false] %s1513_s28 }
 0x1c7   : > { %s1515_s29 = scalar_lea.vmem %s1514_s28, 256  ;;  %p1516_p0 = scmp.lt.s32.totalorder %s1993_s25, %s1514_s28 }
 0x1c8   : > { %p1511_p9 = pnand %p1510_p7, %p1714_p12  ;;  %p1517_p5 = scmp.lt.s32.totalorder %s1515_s29, %s1509_s7 }
 0x1ca   : > { %p1512_p2 = pneg %p1511_p9  ;;  %p1518_p11 = por %p1517_p5, %p1516_p0 }
 0x1cc   : > { %p1519_p1 = pnand %p1518_p11, %p1512_p2 }
 0x1ce   : > { %1522 = shalt.err (!%p1519_p1)
}
 0x1cf   : > { %s1523_s26 = scalar_lea.hbm %s1991_s8, 128  ;;  %s1527_s10 = scalar_lea.hbm %s2066_s4, 256 }
 0x1d0   : > { %p1524_p4 = scmp.ne.s32.totalorder %s1991_s8, %s1523_s26  ;;  %p1528_p10 = scmp.lt.u32.totalorder %s1991_s8, %s2066_s4 }
 0x1d1   : > { %p1529_p13 = scmp.lt.u32.totalorder %s1527_s10, %s1523_s26  ;;  %p1531_p7 = scmp.lt.u32.totalorder %s1523_s26, %s1991_s8 }
 0x1d2   : > { %p1525_p6 = pnand %p1524_p4, %p1714_p12 }
 0x1d3   : > { %p1530_p3 = por %p1529_p13, %p1528_p10 }
 0x1d4   : > { %p1526_p8 = pneg %p1525_p6 }
 0x1d5   : > { %p1532_p9 = por %p1531_p7, %p1530_p3 }
 0x1d7   : > { %p1533_p2 = pnand %p1532_p9, %p1526_p8 }
 0x1d9   : > { %1536 = shalt.err (!%p1533_p2)
}
 0x1da   : > { %1266 = dma.vmem_to_hbm [thread:$0]  (%p1714_p12), %s1993_s25, 128, %s1991_s8, %s1995_s21  }
 0x1db PF: > { %s927_s6 = sand.u32 1, %s1571_s15   ;;  %p2081_p0 = scmp.ne.s32.totalorder %s2071_s22, 0 }
 0x1dc   : > { %p2082_p5 = scmp.ge.s32.totalorder %s1583_s18, 2  ;;  %s928_s12 = scalar_lea.sflag [#allocation4], %s927_s6 }
 0x1de   : > { %p1279_p11 = pnand %p2082_p5, %p2081_p0 }
 0x1e0   : > { %1562 = dma.done.wait (!%p1279_p11), %s928_s12, 4096  }
 0x1e1   : > { %1564 = vsyncadd (!%p1279_p11), %s928_s12, 4294963200  ;;  %s936_s13 = sand.u32 1, %s1056_s20  }
 0x1e2   : > { %s937_s24 = scalar_lea.sflag [#allocation9], %s936_s13 }
 0x1e3   : > { %1566 = dma.done.wait (!%p1279_p11), %s937_s24, 256  }
 0x1e4   : > { %1568 = vsyncadd (!%p1279_p11), %s937_s24, 4294967040  ;;  %p22_p12 = scmp.ge.s32.totalorder %s1679_s27, 4   ;;  %s2083_s15 = smov %s1575_s16 }
 0x1e5   : > { %s2084_s16 = smov %s1579_s17  ;;  %s2085_s17 = smov %s1710_s30 }
 0x1e6   : > { %s2086_s18 = smov %s1679_s27  ;;  %24 = sbr.rel (!%p22_p12) target bundleno = 8 (0x8), region = 109 }
 0x1ed   :  { %951 = vsyncpa [#allocation3], 1 }
 0x1ee   :  { %953 = vsyncpa [#allocation3 + $0x1], 1 }
 0x1ef   :  { %954 = vsyncpa [#allocation6], 1 }
 0x1f0   :  { %955 = vsyncpa [#allocation4], 1 }
 0x1f1   :  { %957 = vsyncpa [#allocation4 + $0x1], 1 }
 0x1f2   :  { %958 = vsyncpa [#allocation9], 1 }
 0x1f3   :  { %960 = vsyncpa [#allocation9 + $0x1], 1 }

</bundles_post_ra>
